<compile_context>
chip_gen: v5e
topology: v5e:2x2
jax: 0.10.0
libtpu: 0.0.40
codegen_flags: <defaults>
</compile_context>

<pallas_src>
import functools

import jax
import jax.numpy as jnp
from jax.experimental import pallas as pl
from jax.experimental.pallas import tpu as pltpu  # noqa: F401  (TPU backend)


def _round_up(n, m):
    return max(m, ((n + m - 1) // m) * m)


# ---------------------------------------------------------------------------
# Fused MLP kernel: chains every Linear (+ optional ReLU) in a single body.
# refs = (x_ref, w0_ref, w1_ref, ..., b_all_ref, out_ref)
# `plan` is a static tuple of ("linear", relu_after) / ("relu", False) ops.
# ---------------------------------------------------------------------------
def _fused_mlp_kernel(*refs, plan):
    x_ref = refs[0]
    out_ref = refs[-1]
    b_all_ref = refs[-2]          # [n_linear, max_dout_pad]  f32
    w_refs = refs[1:-2]           # each [din_pad, dout_pad]  bf16

    h = x_ref[...].astype(jnp.float32)
    wi = 0
    for op, relu_after in plan:
        if op == "relu":
            h = jnp.maximum(h, 0.0)
        else:  # "linear"
            w = w_refs[wi][...]                       # [Din_pad, Dout_pad]
            dout = w.shape[1]
            b = b_all_ref[wi:wi + 1, :dout]           # [1, Dout_pad]  f32 (static slice)
            # bf16 MXU matmul, f32 accumulation; bias/ReLU in f32 (VPU).
            h = jnp.dot(h.astype(w.dtype), w, preferred_element_type=jnp.float32)
            h = h + b
            if relu_after:
                h = jnp.maximum(h, 0.0)
            wi += 1
    out_ref[...] = h.astype(out_ref.dtype)


def fused_mlp_pallas(x, weights, biases, plan):
    """One pallas_call for the whole MLP.  x: [B, Din]; returns [B, Dout_pad]."""
    B = x.shape[0]
    dout_pad = weights[-1].shape[1]
    flat = list(weights) + [biases]

    # Full-array blocks -> exempt from the (8,128) divisibility rule; the
    # compiler sublane-pads B=2 in vregs for free.
    in_specs = [pl.BlockSpec(x.shape, lambda: (0, 0))]
    in_specs += [pl.BlockSpec(p.shape, lambda: (0, 0)) for p in flat]

    flops = 2 * B * sum(int(w.shape[0]) * int(w.shape[1]) for w in weights)
    bytes_accessed = (
        x.size * x.dtype.itemsize
        + sum(int(p.size) * p.dtype.itemsize for p in flat)
        + B * dout_pad * x.dtype.itemsize
    )

    kernel = functools.partial(_fused_mlp_kernel, plan=plan)
    return pl.pallas_call(
        kernel,
        out_shape=jax.ShapeDtypeStruct((B, dout_pad), x.dtype),
        in_specs=in_specs,
        out_specs=pl.BlockSpec((B, dout_pad), lambda: (0, 0)),
        cost_estimate=pl.CostEstimate(
            flops=flops, transcendentals=0, bytes_accessed=bytes_accessed
        ),
    )(x, *flat)


# ---------------------------------------------------------------------------
# Parameter construction (mirrors FullyConnectedModel.__init__).
# All padding / packing happens HERE (once), not per forward call.
# ---------------------------------------------------------------------------
def build_params(key, input_size, num_classes, layers_cfg,
                 param_dtype=jnp.bfloat16):
    """Returns (weights, biases, plan).

    weights : tuple of [Din_pad, Dout_pad] arrays (pre-transposed, lane-padded
              to multiples of 128 with zeros, cast to `param_dtype`).
    biases  : single [n_linear, max_Dout_pad] f32 array (zero-padded lanes).
    plan    : static execution plan for the fused kernel.

    Init mimics nn.Linear's uniform(-1/sqrt(fan_in), +1/sqrt(fan_in)).
    Zero lane-padding is exact: padded activations stay 0 through bias (0),
    ReLU and the next matmul, and padded classifier columns are sliced off.
    """
    # Flatten the config into ordered items (same assumptions as the PyTorch
    # module: classifier fan-in is layers_cfg[-2]['size']).
    items = []
    prev = input_size
    for layer in layers_cfg:
        if layer["type"] == "linear":
            items.append(("linear", prev, layer["size"]))
            prev = layer["size"]
        elif layer["type"] == "relu":
            items.append(("relu",))
    items.append(("linear", layers_cfg[-2]["size"], num_classes))  # classifier

    # Static plan: fuse a ReLU that directly follows a Linear into that Linear.
    plan = []
    i = 0
    while i < len(items):
        it = items[i]
        if it[0] == "linear":
            fuse = (i + 1 < len(items)) and items[i + 1][0] == "relu"
            plan.append(("linear", fuse))
            i += 2 if fuse else 1
        else:  # standalone ReLU -- folded into the same fused kernel
            plan.append(("relu", False))
            i += 1

    # Build lane-padded weights / biases.
    linear_shapes = [(it[1], it[2]) for it in items if it[0] == "linear"]
    w_list, b_list = [], []
    cur_pad = input_size                       # x is not width-padded
    for din, dout in linear_shapes:
        key, kw, kb = jax.random.split(key, 3)
        bound = 1.0 / float(din) ** 0.5
        w = jax.random.uniform(kw, (din, dout), jnp.float32, -bound, bound)
        b = jax.random.uniform(kb, (dout,), jnp.float32, -bound, bound)
        dout_pad = _round_up(dout, 128)
        w_pad = jnp.zeros((cur_pad, dout_pad), jnp.float32).at[:din, :dout].set(w)
        b_pad = jnp.zeros((dout_pad,), jnp.float32).at[:dout].set(b)
        w_list.append(w_pad.astype(param_dtype))
        b_list.append(b_pad)
        cur_pad = dout_pad

    max_pad = max(b.shape[0] for b in b_list)
    biases = jnp.stack([jnp.pad(b, (0, max_pad - b.shape[0])) for b in b_list])
    return tuple(w_list), biases, tuple(plan)


# ---------------------------------------------------------------------------
# Forward pass (mirrors FullyConnectedModel.forward), one jitted program.
# ---------------------------------------------------------------------------
@functools.partial(jax.jit, static_argnames=("plan", "num_classes"))
def forward(x, weights, biases, plan, num_classes):
    B = x.shape[0]
    h = x.reshape(B, -1).astype(jnp.float32)        # x.view(x.size(0), -1)
    out = fused_mlp_pallas(h, weights, biases, plan)
    return out[:, :num_classes]                     # drop classifier lane pad


if __name__ == "__main__":
    # Small shapes consistent with the module's forward:
    # image-like input NCHW [2, 4, 16, 16] -> flattened input_size = 1024.
    B, C, H, W = 2, 4, 16, 16
    input_size = C * H * W
    num_classes = 10
    layers_cfg = [
        {"type": "linear", "size": 32},
        {"type": "relu"},
        {"type": "linear", "size": 32},
        {"type": "relu"},
    ]

    key = jax.random.PRNGKey(0)
    key, kx = jax.random.split(key)
    x = jax.random.normal(kx, (B, C, H, W), jnp.float32)

    weights, biases, plan = build_params(key, input_size, num_classes, layers_cfg)

    out = forward(x, weights, biases, plan, num_classes)
    out = jax.block_until_ready(out)
    assert out.shape == (B, num_classes), out.shape

    # Loose parity check against a pure-JAX f32 reference (bf16 weights ->
    # ~1e-2 relative error is expected; keep an f32-weight path for any
    # tight-tolerance validation).
    h_ref = x.reshape(B, -1)
    wi = 0
    for op, relu_after in plan:
        if op == "relu":
            h_ref = jnp.maximum(h_ref, 0.0)
        else:
            h_ref = h_ref @ weights[wi].astype(jnp.float32) + biases[wi]
            if relu_after:
                h_ref = jnp.maximum(h_ref, 0.0)
            wi += 1
    ref = h_ref[:, :num_classes]
    assert jnp.max(jnp.abs(out - ref)) < 5e-2, float(jnp.max(jnp.abs(out - ref)))

    print("KERNEL_OK")
</pallas_src>

<mosaic_0001>
module attributes {stable_mosaic.version = 11 : i64} {
  func.func @_fused_mlp_kernel(%arg0: memref<2x1024xf32, #tpu.memory_space<vmem>>, %arg1: memref<1024x128xbf16, #tpu.memory_space<vmem>>, %arg2: memref<128x128xbf16, #tpu.memory_space<vmem>>, %arg3: memref<128x128xbf16, #tpu.memory_space<vmem>>, %arg4: memref<3x128xf32, #tpu.memory_space<vmem>>, %arg5: memref<2x128xf32, #tpu.memory_space<vmem>>) attributes {dimension_semantics = [], scalar_prefetch = 0 : i64, scratch_operands = 0 : i64, tpu.core_type = #tpu.core_type<tc>} {
    %c0 = arith.constant 0 : index
    %c0_0 = arith.constant 0 : index
    %0 = vector.load %arg0[%c0, %c0_0] : memref<2x1024xf32, #tpu.memory_space<vmem>>, vector<2x1024xf32>
    %c0_1 = arith.constant 0 : index
    %c0_2 = arith.constant 0 : index
    %1 = vector.load %arg1[%c0_1, %c0_2] : memref<1024x128xbf16, #tpu.memory_space<vmem>>, vector<1024x128xbf16>
    %c0_3 = arith.constant 0 : index
    %c0_4 = arith.constant 0 : index
    %2 = vector.load %arg4[%c0_3, %c0_4] : memref<3x128xf32, #tpu.memory_space<vmem>>, vector<1x128xf32>
    %3 = arith.truncf %0 : vector<2x1024xf32> to vector<2x1024xbf16>
    %cst = arith.constant dense<0.000000e+00> : vector<2x128xf32>
    %4 = tpu.matmul %3, %1, %cst {dimension_numbers = #tpu.dot_dimension_numbers<[1], [0], [0], [1], [0, 0, 1, 1], [], []>} : vector<2x1024xbf16>, vector<1024x128xbf16>, vector<2x128xf32> -> vector<2x128xf32>
    %5 = vector.broadcast %2 : vector<1x128xf32> to vector<2x128xf32>
    %6 = arith.addf %4, %5 : vector<2x128xf32>
    %cst_5 = arith.constant 0.000000e+00 : f32
    %7 = vector.broadcast %cst_5 : f32 to vector<2x128xf32>
    %8 = arith.maximumf %6, %7 : vector<2x128xf32>
    %c0_6 = arith.constant 0 : index
    %c0_7 = arith.constant 0 : index
    %9 = vector.load %arg2[%c0_6, %c0_7] : memref<128x128xbf16, #tpu.memory_space<vmem>>, vector<128x128xbf16>
    %c1 = arith.constant 1 : index
    %c0_8 = arith.constant 0 : index
    %10 = vector.load %arg4[%c1, %c0_8] : memref<3x128xf32, #tpu.memory_space<vmem>>, vector<1x128xf32>
    %11 = arith.truncf %8 : vector<2x128xf32> to vector<2x128xbf16>
    %cst_9 = arith.constant dense<0.000000e+00> : vector<2x128xf32>
    %12 = tpu.matmul %11, %9, %cst_9 {dimension_numbers = #tpu.dot_dimension_numbers<[1], [0], [0], [1], [0, 0, 1, 1], [], []>} : vector<2x128xbf16>, vector<128x128xbf16>, vector<2x128xf32> -> vector<2x128xf32>
    %13 = vector.broadcast %10 : vector<1x128xf32> to vector<2x128xf32>
    %14 = arith.addf %12, %13 : vector<2x128xf32>
    %cst_10 = arith.constant 0.000000e+00 : f32
    %15 = vector.broadcast %cst_10 : f32 to vector<2x128xf32>
    %16 = arith.maximumf %14, %15 : vector<2x128xf32>
    %c0_11 = arith.constant 0 : index
    %c0_12 = arith.constant 0 : index
    %17 = vector.load %arg3[%c0_11, %c0_12] : memref<128x128xbf16, #tpu.memory_space<vmem>>, vector<128x128xbf16>
    %c2 = arith.constant 2 : index
    %c0_13 = arith.constant 0 : index
    %18 = vector.load %arg4[%c2, %c0_13] : memref<3x128xf32, #tpu.memory_space<vmem>>, vector<1x128xf32>
    %19 = arith.truncf %16 : vector<2x128xf32> to vector<2x128xbf16>
    %cst_14 = arith.constant dense<0.000000e+00> : vector<2x128xf32>
    %20 = tpu.matmul %19, %17, %cst_14 {dimension_numbers = #tpu.dot_dimension_numbers<[1], [0], [0], [1], [0, 0, 1, 1], [], []>} : vector<2x128xbf16>, vector<128x128xbf16>, vector<2x128xf32> -> vector<2x128xf32>
    %21 = vector.broadcast %18 : vector<1x128xf32> to vector<2x128xf32>
    %22 = arith.addf %20, %21 : vector<2x128xf32>
    %c0_15 = arith.constant 0 : index
    %c0_16 = arith.constant 0 : index
    %23 = vector.load %arg5[%c0_15, %c0_16] : memref<2x128xf32, #tpu.memory_space<vmem>>, vector<2x128xf32>
    tpu.vector_store %arg5[%c0_15, %c0_16], %22 {strides = array<i32>} : memref<2x128xf32, #tpu.memory_space<vmem>>, vector<2x128xf32>,
    return
  }
}

</mosaic_0001>

<bundles_post_ra>
// kernel: forward.1
= control target key start
LH: loop header
LB: loop body
LE: loop exit
PB: predicated region body
PF: predicated region fallthrough
CT: control target
= control target key end

     0   :  { %10 = vsyncpa [#allocation3], 0  ;;  %s1428_s0 = inlined_call_operand.vmem [shape: f32[2,1024], index: 0, kind: input, shape index: {}]   ;;  %s1429_s1 = inlined_call_operand.hbm [shape: bf16[1024,128], index: 1, kind: input, shape index: {}]   ;;  %s1430_s2 = inlined_call_operand.vmem [shape: bf16[128,128], index: 2, kind: input, shape index: {}]   ;;  %s1431_s3 = inlined_call_operand.vmem [shape: bf16[128,128], index: 3, kind: input, shape index: {}]   ;;  %s1432_s4 = inlined_call_operand.vmem [shape: f32[3,128], index: 4, kind: input, shape index: {}]   ;;  %s1433_s5 = inlined_call_operand.hbm [shape: f32[2,128], index: 5, kind: output, shape index: {}]  }
   0x1   :  { %11 = vsyncpa [#allocation4], 0  ;;  %s18_s20 = sshll.u32 %s1429_s1, 4  ;;  %s1325_s21 = smov [#allocation2]   ;;  %s19_s20 = int_to_ptr.hbm [resolvable:$true] %s18_s20 }
   0x2   :  { %s20_s22 = sshll.u32 %s1325_s21, 4  ;;  %s1326_s23 = smov 64   ;;  %s21_s22 = int_to_ptr.vmem [resolvable:$true] %s20_s22 }
   0x3   :  { %s1327_s24 = smov 4  }
   0x4   :  { %26 = dma.hbm_to_vmem [thread:$0]  %s19_s20, 8192, %s21_s22, [#allocation3], %s1326_s23, %s1326_s23, %s1327_s24  }
   0x5   :  { %1321 = dma.done.wait [#allocation3], 8192  }
   0x6   :  { %1322 = vsyncadd [#allocation3], 4294959104  ;;  %v1193_v0 = vld [vmem:[#allocation2 + $0x38] sm:$0xff]  ;;  %v1192_v4 = vld [vmem:[#allocation2 + $0x30] sm:$0xff]  ;;  %s1328_s12 = smov [#allocation5]  }
   0x7   :  { %v1201_v1 = vld [vmem:[#allocation2 + $0x78] sm:$0xff]  ;;  %582 = vmatpush.bf16.msra.mxu0 %v1193_v0  ;;  %v1200_v5 = vld [vmem:[#allocation2 + $0x70] sm:$0xff]  ;;  %v1191_v8 = vld [vmem:[#allocation2 + $0x28] sm:$0xff]  ;;  %s854_s13 = sshll.u32 %s1328_s12, 4  ;;  %s855_s13 = int_to_ptr.vmem [resolvable:$true] %s854_s13 }
   0x8   :  { %v1209_v2 = vld [vmem:[#allocation2 + $0xb8] sm:$0xff]  ;;  %595 = vmatpush.bf16.msra.mxu1 %v1201_v1  ;;  %v1208_v6 = vld [vmem:[#allocation2 + $0xb0] sm:$0xff]  ;;  %v1199_v9 = vld [vmem:[#allocation2 + $0x68] sm:$0xff] }
   0x9   :  { %v1217_v3 = vld [vmem:[#allocation2 + $0xf8] sm:$0xff]  ;;  %608 = vmatpush.bf16.msra.mxu2 %v1209_v2  ;;  %v1216_v7 = vld [vmem:[#allocation2 + $0xf0] sm:$0xff]  ;;  %v1207_v10 = vld [vmem:[#allocation2 + $0xa8] sm:$0xff] }
   0xa   :  { %621 = vmatpush.bf16.msra.mxu3 %v1217_v3  ;;  %v1215_v11 = vld [vmem:[#allocation2 + $0xe8] sm:$0xff]  ;;  %v1190_v12 = vld [vmem:[#allocation2 + $0x20] sm:$0xff]  ;;  %v37_v16 = vld [vmem:[%s1428_s0] sm:$0xff] }
   0xb   :  { %583 = vmatpush.bf16.msra.mxu0 %v1192_v4  ;;  %v1198_v13 = vld [vmem:[#allocation2 + $0x60] sm:$0xff]  ;;  %v1189_v17 = vld [vmem:[#allocation2 + $0x18] sm:$0xff]  ;;  %170 = vst [vmem:[#allocation1] ss:$4 sm:$0xff] %v37_v16  ;;  %v1188_v21 = vld [vmem:[#allocation2 + $0x10] sm:$0xff] }
   0xc   :  { %596 = vmatpush.bf16.msra.mxu1 %v1200_v5  ;;  %v1206_v14 = vld [vmem:[#allocation2 + $0xa0] sm:$0xff]  ;;  %v1197_v18 = vld [vmem:[#allocation2 + $0x58] sm:$0xff]  ;;  %v1196_v22 = vld [vmem:[#allocation2 + $0x50] sm:$0xff] }
   0xd   :  { %609 = vmatpush.bf16.msra.mxu2 %v1208_v6  ;;  %v1214_v15 = vld [vmem:[#allocation2 + $0xe0] sm:$0xff]  ;;  %v1205_v19 = vld [vmem:[#allocation2 + $0x98] sm:$0xff]  ;;  %v1204_v23 = vld [vmem:[#allocation2 + $0x90] sm:$0xff] }
   0xe   :  { %622 = vmatpush.bf16.msra.mxu3 %v1216_v7  ;;  %v1213_v20 = vld [vmem:[#allocation2 + $0xd8] sm:$0xff]  ;;  %v1212_v24 = vld [vmem:[#allocation2 + $0xd0] sm:$0xff]  ;;  %v1187_v25 = vld [vmem:[#allocation2 + $0x8] sm:$0xff] }
   0xf   :  { %584 = vmatpush.bf16.msra.mxu0 %v1191_v8  ;;  %v1195_v26 = vld [vmem:[#allocation2 + $0x48] sm:$0xff]  ;;  %v38_v29 = vld [vmem:[%s1428_s0 + $0x8] sm:$0xff]  ;;  %v1225_v34 = vld [vmem:[#allocation2 + $0x138] sm:$0xff] }
  0x10   :  { %597 = vmatpush.bf16.msra.mxu1 %v1199_v9  ;;  %v1203_v27 = vld [vmem:[#allocation2 + $0x88] sm:$0xff]  ;;  %v1186_v30 = vld [vmem:[#allocation2] sm:$0xff]  ;;  %172 = vst [vmem:[#allocation1 + $0x20] ss:$4 sm:$0xff] %v38_v29  ;;  %v1233_v35 = vld [vmem:[#allocation2 + $0x178] sm:$0xff] }
  0x11   :  { %610 = vmatpush.bf16.msra.mxu2 %v1207_v10  ;;  %v1211_v28 = vld [vmem:[#allocation2 + $0xc8] sm:$0xff]  ;;  %v1194_v31 = vld [vmem:[#allocation2 + $0x40] sm:$0xff]  ;;  %v1241_v40 = vld [vmem:[#allocation2 + $0x1b8] sm:$0xff] }
  0x12   :  { %623 = vmatpush.bf16.msra.mxu3 %v1215_v11  ;;  %v1202_v32 = vld [vmem:[#allocation2 + $0x80] sm:$0xff]  ;;  %v175_v36 = vld.sshfl [vmem:[#allocation1 + $0x10] sm:$0xff pattern:$0x73625140]  ;;  %v1249_v41 = vld [vmem:[#allocation2 + $0x1f8] sm:$0xff] }
  0x13   :  { %585 = vmatpush.bf16.msra.mxu0 %v1190_v12  ;;  %v1210_v33 = vld [vmem:[#allocation2 + $0xc0] sm:$0xff]  ;;  %v173_v37 = vld.sshfl [vmem:[#allocation1] sm:$0xff pattern:$0x73625140]  ;;  %v191_v42 = vpack.c.bf16 %v175_v36, %v175_v36  ;;  %v1224_v46 = vld [vmem:[#allocation2 + $0x130] sm:$0xff] }
  0x14   :  { %598 = vmatpush.bf16.msra.mxu1 %v1198_v13  ;;  %v176_v38 = vld.sshfl [vmem:[#allocation1 + $0x18] sm:$0xff pattern:$0x73625140]  ;;  %v174_v39 = vld.sshfl [vmem:[#allocation1 + $0x8] sm:$0xff pattern:$0x73625140]  ;;  %v189_v43 = vpack.c.bf16 %v173_v37, %v173_v37 }
  0x15   :  { %611 = vmatpush.bf16.msra.mxu2 %v1206_v14  ;;  %v192_v44 = vpack.c.bf16 %v176_v38, %v176_v38  ;;  %v190_v45 = vpack.c.bf16 %v174_v39, %v174_v39  ;;  %v1232_v47 = vld [vmem:[#allocation2 + $0x170] sm:$0xff]  ;;  %v1223_v50 = vld [vmem:[#allocation2 + $0x128] sm:$0xff]  ;;  %v1222_v54 = vld [vmem:[#allocation2 + $0x120] sm:$0xff] }
  0x16   :  { %624 = vmatpush.bf16.msra.mxu3 %v1214_v15  ;;  %v1240_v48 = vld [vmem:[#allocation2 + $0x1b0] sm:$0xff]  ;;  %v1231_v51 = vld [vmem:[#allocation2 + $0x168] sm:$0xff]  ;;  %v1230_v55 = vld [vmem:[#allocation2 + $0x160] sm:$0xff] }
  0x17   :  { %586 = vmatpush.bf16.msra.mxu0 %v1189_v17  ;;  %v1248_v49 = vld [vmem:[#allocation2 + $0x1f0] sm:$0xff]  ;;  %v1239_v52 = vld [vmem:[#allocation2 + $0x1a8] sm:$0xff]  ;;  %v1238_v56 = vld [vmem:[#allocation2 + $0x1a0] sm:$0xff] }
  0x18   :  { %599 = vmatpush.bf16.msra.mxu1 %v1197_v18  ;;  %v1247_v53 = vld [vmem:[#allocation2 + $0x1e8] sm:$0xff]  ;;  %v1246_v57 = vld [vmem:[#allocation2 + $0x1e0] sm:$0xff]  ;;  %v1221_v58 = vld [vmem:[#allocation2 + $0x118] sm:$0xff] }
  0x19   :  { %612 = vmatpush.bf16.msra.mxu2 %v1205_v19  ;;  %v1229_v59 = vld [vmem:[#allocation2 + $0x158] sm:$0xff]  ;;  %v1220_v62 = vld [vmem:[#allocation2 + $0x110] sm:$0xff]  ;;  %v1219_v2 = vld [vmem:[#allocation2 + $0x108] sm:$0xff] }
  0x1a   :  { %625 = vmatpush.bf16.msra.mxu3 %v1213_v20  ;;  %v1237_v60 = vld [vmem:[#allocation2 + $0x198] sm:$0xff]  ;;  %v1228_v63 = vld [vmem:[#allocation2 + $0x150] sm:$0xff]  ;;  %v1227_v3 = vld [vmem:[#allocation2 + $0x148] sm:$0xff] }
  0x1b   :  { %587 = vmatpush.bf16.msra.mxu0 %v1188_v21  ;;  %v1245_v61 = vld [vmem:[#allocation2 + $0x1d8] sm:$0xff]  ;;  %v1236_v0 = vld [vmem:[#allocation2 + $0x190] sm:$0xff]  ;;  %v1235_v4 = vld [vmem:[#allocation2 + $0x188] sm:$0xff] }
  0x1c   :  { %600 = vmatpush.bf16.msra.mxu1 %v1196_v22  ;;  %v1244_v1 = vld [vmem:[#allocation2 + $0x1d0] sm:$0xff]  ;;  %v1243_v5 = vld [vmem:[#allocation2 + $0x1c8] sm:$0xff]  ;;  %v1218_v6 = vld [vmem:[#allocation2 + $0x100] sm:$0xff] }
  0x1d   :  { %613 = vmatpush.bf16.msra.mxu2 %v1204_v23  ;;  %v1226_v7 = vld [vmem:[#allocation2 + $0x140] sm:$0xff]  ;;  %v177_v10 = vld.sshfl [vmem:[#allocation1 + $0x20] sm:$0xff pattern:$0x73625140]  ;;  %v1257_v18 = vld [vmem:[%s1430_s2 + $0x38] sm:$0xff] }
  0x1e   :  { %626 = vmatpush.bf16.msra.mxu3 %v1212_v24  ;;  %v1234_v8 = vld [vmem:[#allocation2 + $0x180] sm:$0xff]  ;;  %v179_v12 = vld.sshfl [vmem:[#allocation1 + $0x30] sm:$0xff pattern:$0x73625140]  ;;  %v193_v14 = vpack.c.bf16 %v177_v10, %v177_v10  ;;  %v1254_v21 = vld [vmem:[%s1430_s2 + $0x20] sm:$0xff] }
  0x1f   :  { %588 = vmatpush.bf16.msra.mxu0 %v1187_v25  ;;  %v1242_v9 = vld [vmem:[#allocation2 + $0x1c0] sm:$0xff]  ;;  %v180_v13 = vld.sshfl [vmem:[#allocation1 + $0x38] sm:$0xff pattern:$0x73625140]  ;;  %v195_v16 = vpack.c.bf16 %v179_v12, %v179_v12  ;;  %v1256_v19 = vld [vmem:[%s1430_s2 + $0x30] sm:$0xff] }
  0x20   :  { %601 = vmatpush.bf16.msra.mxu1 %v1195_v26  ;;  %v178_v11 = vld.sshfl [vmem:[#allocation1 + $0x28] sm:$0xff pattern:$0x73625140]  ;;  %v196_v17 = vpack.c.bf16 %v180_v13, %v180_v13  ;;  %v1253_v22 = vld [vmem:[%s1430_s2 + $0x18] sm:$0xff]  ;;  %v1252_v24 = vld [vmem:[%s1430_s2 + $0x10] sm:$0xff] }
  0x21   :  { %614 = vmatpush.bf16.msra.mxu2 %v1203_v27  ;;  %v194_v15 = vpack.c.bf16 %v178_v11, %v178_v11  ;;  %v1255_v20 = vld [vmem:[%s1430_s2 + $0x28] sm:$0xff]  ;;  %v1264_v36 = vld [vmem:[%s1431_s3 + $0x30] sm:$0xff] }
  0x22   :  { %627 = vmatpush.bf16.msra.mxu3 %v1211_v28  ;;  %v1251_v26 = vld [vmem:[%s1430_s2 + $0x8] sm:$0xff] }
  0x23   :  { %589 = vmatpush.bf16.msra.mxu0 %v1186_v30  ;;  %v1250_v30 = vld [vmem:[%s1430_s2] sm:$0xff]  ;;  %v1263_v38 = vld [vmem:[%s1431_s3 + $0x28] sm:$0xff] }
  0x24   :  { %602 = vmatpush.bf16.msra.mxu1 %v1194_v31 }
  0x25   :  { %615 = vmatpush.bf16.msra.mxu2 %v1202_v32  ;;  %v1270_v32 = vld [vmem:[%s1432_s4] ss:$0 sm:$0xff] }
  0x26   :  { %628 = vmatpush.bf16.msra.mxu3 %v1210_v33  ;;  %590 = vmatmul.bf16.vlgmr.msra.gmra.mxu0 %v189_v43  ;;  %v1265_v33 = vld [vmem:[%s1431_s3 + $0x38] sm:$0xff] }
  0x27   :  { %634 = vmatpush.bf16.msrb.mxu0 %v1225_v34  ;;  %603 = vmatmul.bf16.vlgmr.msra.gmra.mxu1 %v190_v45 }
  0x28   :  { %647 = vmatpush.bf16.msrb.mxu1 %v1233_v35  ;;  %616 = vmatmul.bf16.vlgmr.msra.gmra.mxu2 %v191_v42  ;;  %v1261_v42 = vld [vmem:[%s1431_s3 + $0x18] sm:$0xff] }
  0x29   :  { %660 = vmatpush.bf16.msrb.mxu2 %v1241_v40  ;;  %629 = vmatmul.bf16.vlgmr.msra.gmra.mxu3 %v192_v44  ;;  %v1262_v40 = vld [vmem:[%s1431_s3 + $0x20] sm:$0xff] }
  0x2a   :  { %673 = vmatpush.bf16.msrb.mxu3 %v1249_v41 }
  0x2b   :  { %635 = vmatpush.bf16.msrb.mxu0 %v1224_v46 }
  0x2c   :  { %648 = vmatpush.bf16.msrb.mxu1 %v1232_v47  ;;  %v1260_v47 = vld [vmem:[%s1431_s3 + $0x10] sm:$0xff] }
  0x2d   :  { %661 = vmatpush.bf16.msrb.mxu2 %v1240_v48 }
  0x2e   :  { %674 = vmatpush.bf16.msrb.mxu3 %v1248_v49 }
  0x2f   :  { %636 = vmatpush.bf16.msrb.mxu0 %v1223_v50 }
  0x30   :  { %649 = vmatpush.bf16.msrb.mxu1 %v1231_v51 }
  0x31   :  { %662 = vmatpush.bf16.msrb.mxu2 %v1239_v52 }
  0x32   :  { %675 = vmatpush.bf16.msrb.mxu3 %v1247_v53 }
  0x33   :  { %637 = vmatpush.bf16.msrb.mxu0 %v1222_v54 }
  0x34   :  { %650 = vmatpush.bf16.msrb.mxu1 %v1230_v55 }
  0x35   :  { %663 = vmatpush.bf16.msrb.mxu2 %v1238_v56 }
  0x36   :  { %676 = vmatpush.bf16.msrb.mxu3 %v1246_v57 }
  0x37   :  { %638 = vmatpush.bf16.msrb.mxu0 %v1221_v58 }
  0x38   :  { %651 = vmatpush.bf16.msrb.mxu1 %v1229_v59  ;;  %v1259_v59 = vld [vmem:[%s1431_s3 + $0x8] sm:$0xff] }
  0x39   :  { %664 = vmatpush.bf16.msrb.mxu2 %v1237_v60  ;;  %v1258_v60 = vld [vmem:[%s1431_s3] sm:$0xff]  ;;  %s856_s3 = sshll.u32 %s1433_s5, 4  ;;  %s857_s3 = int_to_ptr.hbm [resolvable:$true] %s856_s3 }
  0x3a   :  { %677 = vmatpush.bf16.msrb.mxu3 %v1245_v61  ;;  %v1271_v61 = vld [vmem:[%s1432_s4 + $0x1] ss:$0 sm:$0xff] }
  0x3b   :  { %639 = vmatpush.bf16.msrb.mxu0 %v1220_v62 }
  0x3c   :  { %652 = vmatpush.bf16.msrb.mxu1 %v1228_v63 }
  0x3d   :  { %665 = vmatpush.bf16.msrb.mxu2 %v1236_v0 }
  0x3e   :  { %678 = vmatpush.bf16.msrb.mxu3 %v1244_v1 }
  0x3f   :  { %640 = vmatpush.bf16.msrb.mxu0 %v1219_v2 }
  0x40   :  { %653 = vmatpush.bf16.msrb.mxu1 %v1227_v3  ;;  %v1272_v3 = vld [vmem:[%s1432_s4 + $0x2] ss:$0 sm:$0xff] }
  0x41   :  { %666 = vmatpush.bf16.msrb.mxu2 %v1235_v4 }
  0x42   :  { %679 = vmatpush.bf16.msrb.mxu3 %v1243_v5 }
  0x43   :  { %641 = vmatpush.bf16.msrb.mxu0 %v1218_v6 }
  0x44   :  { %654 = vmatpush.bf16.msrb.mxu1 %v1226_v7 }
  0x45   :  { %667 = vmatpush.bf16.msrb.mxu2 %v1234_v8 }
  0x46   :  { %680 = vmatpush.bf16.msrb.mxu3 %v1242_v9  ;;  %642 = vmatmul.bf16.vlgmr.msrb.gmra.mxu0 %v193_v14 }
  0x47   :  { %655 = vmatmul.bf16.vlgmr.msrb.gmra.mxu1 %v194_v15  ;;  %754 = vmatpush.bf16.msra.mxu0 %v1257_v18 }
  0x48   :  { %668 = vmatmul.bf16.vlgmr.msrb.gmra.mxu2 %v195_v16  ;;  %835 = vmatpush.bf16.msra.mxu1 %v1265_v33 }
  0x49   :  { %681 = vmatmul.bf16.vlgmr.msrb.gmra.mxu3 %v196_v17 }
  0x4b   :  { %755 = vmatpush.bf16.msra.mxu0 %v1256_v19 }
  0x4c   :  { %836 = vmatpush.bf16.msra.mxu1 %v1264_v36 }
  0x4f   :  { %756 = vmatpush.bf16.msra.mxu0 %v1255_v20 }
  0x50   :  { %837 = vmatpush.bf16.msra.mxu1 %v1263_v38 }
  0x53   :  { %757 = vmatpush.bf16.msra.mxu0 %v1254_v21 }
  0x54   :  { %838 = vmatpush.bf16.msra.mxu1 %v1262_v40 }
  0x57   :  { %758 = vmatpush.bf16.msra.mxu0 %v1253_v22 }
  0x58   :  { %839 = vmatpush.bf16.msra.mxu1 %v1261_v42 }
  0x5b   :  { %759 = vmatpush.bf16.msra.mxu0 %v1252_v24 }
  0x5c   :  { %840 = vmatpush.bf16.msra.mxu1 %v1260_v47 }
  0x5f   :  { %760 = vmatpush.bf16.msra.mxu0 %v1251_v26 }
  0x60   :  { %841 = vmatpush.bf16.msra.mxu1 %v1259_v59 }
  0x63   :  { %761 = vmatpush.bf16.msra.mxu0 %v1250_v30 }
  0x64   :  { %842 = vmatpush.bf16.msra.mxu1 %v1258_v60 }
  0xa3   :  { %v591_v23 = vpop.f32.mrf.mxu0 }
  0xa4   :  { %v604_v25 = vpop.f32.mrf.mxu1  ;;  %v592_v37 = vadd.f32 %v1270_v32, %v591_v23 }
  0xa6   :  { %v605_v39 = vadd.f32 %v604_v25, %v592_v37 }
  0xab   :  { %v617_v27 = vpop.f32.mrf.mxu2  ;;  %v593_v29 = vpop.f32.mrf.mxu0 }
  0xac   :  { %v630_v28 = vpop.f32.mrf.mxu3  ;;  %v606_v31 = vpop.f32.mrf.mxu1  ;;  %v618_v41 = vadd.f32 %v617_v27, %v605_v39 }
  0xae   :  { %v631_v43 = vadd.f32 %v630_v28, %v618_v41 }
  0xb3   :  { %v619_v34 = vpop.f32.mrf.mxu2 }
  0xb4   :  { %v632_v35 = vpop.f32.mrf.mxu3 }
  0xc3   :  { %v643_v44 = vpop.f32.mrf.mxu0 }
  0xc4   :  { %v656_v45 = vpop.f32.mrf.mxu1  ;;  %v644_v46 = vadd.f32 %v643_v44, %v631_v43 }
  0xc6   :  { %v657_v48 = vadd.f32 %v656_v45, %v644_v46 }
  0xcb   :  { %v669_v49 = vpop.f32.mrf.mxu2  ;;  %v645_v52 = vpop.f32.mrf.mxu0 }
  0xcc   :  { %v682_v50 = vpop.f32.mrf.mxu3  ;;  %v670_v51 = vadd.f32 %v669_v49, %v657_v48  ;;  %v658_v53 = vpop.f32.mrf.mxu1 }
  0xce   :  { %v683_v54 = vadd.f32 %v682_v50, %v670_v51 }
  0xd0   :  { %v686_v55 = vmax.f32 %v683_v54, 0.0 }
  0xd2   :  { %v704_v56 = vpack.c.bf16 %v686_v55, %v686_v55 }
  0xd3   :  { %v671_v57 = vpop.f32.mrf.mxu2 }
  0xd4   :  { %v684_v58 = vpop.f32.mrf.mxu3  ;;  %762 = vmatmul.bf16.vlgmr.msra.gmra.mxu0 %v704_v56 }
 0x151   :  { %v763_v62 = vpop.f32.mrf.mxu0 }
 0x152   :  { %v764_v63 = vadd.f32 %v1271_v61, %v763_v62 }
 0x154   :  { %v767_v0 = vmax.f32 %v764_v63, 0.0 }
 0x156   :  { %v785_v1 = vpack.c.bf16 %v767_v0, %v767_v0 }
 0x158   :  { %843 = vmatmul.bf16.vlgmr.msra.gmra.mxu1 %v785_v1 }
 0x159   :  { %v765_v2 = vpop.f32.mrf.mxu0 }
 0x1d5   :  { %v844_v4 = vpop.f32.mrf.mxu1 }
 0x1d6   :  { %v845_v5 = vadd.f32 %v1272_v3, %v844_v4 }
 0x1d8   :  { %848 = vst [vmem:[#allocation5] sm:$0x3] %v845_v5 }
 0x1d9   :  { %859 = dma.vmem_to_hbm [thread:$0]  %s855_s13, 32, %s857_s3, [#allocation4]  }
 0x1dd   :  { %v846_v6 = vpop.f32.mrf.mxu1 }
 0x1de   :  { %1323 = dma.done.wait [#allocation4], 32  }
 0x1df   :  { %1324 = vsyncadd [#allocation4], 4294967264 }
 0x1e0   :  { %864 = vsyncpa [#allocation3], 1 }
 0x1e1   :  { %865 = vsyncpa [#allocation4], 1 }

</bundles_post_ra>
